<compile_context>
chip_gen: v6e
topology: v6e:2x2x1
jax: 0.10.0
libtpu: 0.0.40
codegen_flags: <defaults>
</compile_context>

<pallas_src>
import functools

import jax
import jax.numpy as jnp
from jax.experimental import pallas as pl
from jax.experimental.pallas import tpu as pltpu


# ----------------------------------------------------------------------------
# Fused kernel: one (batch image, row tile) per grid step.
# ----------------------------------------------------------------------------
def _fused_dense_unit_kernel(x_ref, s1_ref, b1_ref, w1_ref, b2_ref, w2_ref,
                             o_ref, ypad_ref, *, H, W, TH, C_in, C_mid, C_out):
    """
    x_ref   : (1, H, W, C_in)        f32   whole input image (resident across row tiles)
    s1/b1   : (1, C_in)              f32   folded BN1 scale / bias
    w1_ref  : (C_in, C_mid)          bf16  1x1 conv weight with BN2 scale folded in
    b2_ref  : (1, C_mid)             f32   folded BN2 bias
    w2_ref  : (9*C_mid, C_out)       bf16  3x3 weight in im2col layout ((kh,kw,C_mid) x C_out)
    o_ref   : (1, TH, W, C_in+C_out) f32   fused [x, conv3x3(y)] output row tile
    ypad_ref: (TH+2, W+2, C_mid)     f32   VMEM halo buffer for the 1x1 result
    """
    r = pl.program_id(1)
    nrt = pl.num_programs(1)
    row0 = pl.multiple_of(r * TH, TH)

    def bn_relu_conv1(rows2d):                               # (M, C_in) f32 -> (M, C_mid) f32
        a = jnp.maximum(rows2d * s1_ref[...] + b1_ref[...], 0.0)          # VPU, f32
        y = jnp.dot(a.astype(jnp.bfloat16), w1_ref[...],
                    preferred_element_type=jnp.float32)                   # MXU
        return jnp.maximum(y + b2_ref[...], 0.0)

    # --- zero only the 1-px left/right border strips (interior/halo rows fully overwritten) --
    zcol = jnp.zeros((TH + 2, 1, C_mid), jnp.float32)
    ypad_ref[:, 0:1, :] = zcol
    ypad_ref[:, W + 1:W + 2, :] = zcol

    # --- interior rows of this tile: BN1 -> ReLU -> 1x1(+BN2) -> ReLU ------------------------
    xt = x_ref[0, pl.ds(row0, TH), :, :]                     # (TH, W, C_in) f32
    y_in = bn_relu_conv1(xt.reshape(TH * W, C_in))
    ypad_ref[1:TH + 1, 1:W + 1, :] = y_in.reshape(TH, W, C_mid)

    # --- halo rows: recompute from the resident x image; clamped index + zero mask at the
    #     image border (conv2 has padding=1, i.e. y is padded with zeros). Branch-free. -------
    top_idx = jnp.maximum(row0 - 1, 0)
    y_top = bn_relu_conv1(x_ref[0, pl.ds(top_idx, 1), :, :].reshape(W, C_in))
    y_top = y_top * (r > 0).astype(jnp.float32)
    ypad_ref[0:1, 1:W + 1, :] = y_top.reshape(1, W, C_mid)

    bot_idx = jnp.minimum(row0 + TH, H - 1)
    y_bot = bn_relu_conv1(x_ref[0, pl.ds(bot_idx, 1), :, :].reshape(W, C_in))
    y_bot = y_bot * (r < nrt - 1).astype(jnp.float32)
    ypad_ref[TH + 1:TH + 2, 1:W + 1, :] = y_bot.reshape(1, W, C_mid)

    # --- 3x3 conv as im2col: 9 shifted views -> one (TH*W, 9*C_mid) operand, ONE MXU matmul --
    cols = [ypad_ref[kh:kh + TH, kw:kw + W, :].reshape(TH * W, C_mid)
            for kh in range(3) for kw in range(3)]
    patches = jnp.concatenate(cols, axis=-1).astype(jnp.bfloat16)          # (TH*W, 9*C_mid)
    z = jnp.dot(patches, w2_ref[...], preferred_element_type=jnp.float32)  # (TH*W, C_out)

    # --- fused channel concat: single full-block store, no double-write of the passthrough ---
    o_ref[0] = jnp.concatenate([xt, z.reshape(TH, W, C_out)], axis=-1)


# ----------------------------------------------------------------------------
# Parameter folding (BN1 into scale/bias, BN2 into the 1x1 conv, 3x3 in im2col layout).
# ----------------------------------------------------------------------------
def _fold_params(params, eps=1e-5):
    s1 = params["bn1_gamma"] * jax.lax.rsqrt(params["bn1_var"] + eps)      # (C_in,)
    b1 = params["bn1_beta"] - params["bn1_mean"] * s1
    s2 = params["bn2_gamma"] * jax.lax.rsqrt(params["bn2_var"] + eps)      # (C_mid,)
    b2 = params["bn2_beta"] - params["bn2_mean"] * s2

    w1 = params["conv1_w"][:, :, 0, 0]                   # (C_mid, C_in)
    w1_fold = (w1 * s2[:, None]).T                        # (C_in, C_mid), BN2 folded

    w2 = params["conv2_w"]                                # (C_out, C_mid, 3, 3)
    c_out, c_mid = w2.shape[0], w2.shape[1]
    # im2col layout: rows ordered (kh, kw, c_mid) to match the in-kernel patch concatenation.
    w2_im2col = jnp.transpose(w2, (2, 3, 1, 0)).reshape(9 * c_mid, c_out)

    return (s1.reshape(1, -1).astype(jnp.float32),
            b1.reshape(1, -1).astype(jnp.float32),
            w1_fold.astype(jnp.bfloat16),
            b2.reshape(1, -1).astype(jnp.float32),
            w2_im2col.astype(jnp.bfloat16))


def _pick_tile_h(H, target):
    th = max(1, min(int(target), H))
    while H % th:
        th -= 1
    return th


# ----------------------------------------------------------------------------
# Channels-last fast path (recommended entry point: no layout transposes at all).
# ----------------------------------------------------------------------------
def q_dense_unit_forward_nhwc(x_nhwc, params, input_scaling_factor=None, *, tile_h=8):
    """x_nhwc: (N, H, W, C_in) f32 -> ((N, H, W, C_in + C_out) f32, act_scaling_factor)."""
    s1, b1, w1_fold, b2, w2_im2col = _fold_params(params)
    N, H, W, C_in = x_nhwc.shape
    C_mid = w1_fold.shape[1]
    C_out = w2_im2col.shape[-1]
    C_tot = C_in + C_out
    TH = _pick_tile_h(H, tile_h)
    HT = H // TH

    kernel = functools.partial(_fused_dense_unit_kernel,
                               H=H, W=W, TH=TH, C_in=C_in, C_mid=C_mid, C_out=C_out)

    flops = 2 * N * H * W * (C_in * C_mid + 9 * C_mid * C_out)
    bytes_accessed = 4 * (N * H * W * C_in + N * H * W * C_tot) \
        + 2 * (int(w1_fold.size) + int(w2_im2col.size)) \
        + 4 * (2 * C_in + C_mid)

    out = pl.pallas_call(
        kernel,
        out_shape=jax.ShapeDtypeStruct((N, H, W, C_tot), jnp.float32),
        grid=(N, HT),
        in_specs=[
            # whole image per n; constant block index across row tiles -> fetched once,
            # stays VMEM-resident while the row tiles iterate.
            pl.BlockSpec((1, H, W, C_in), lambda n, r: (n, 0, 0, 0)),
            pl.BlockSpec((1, C_in), lambda n, r: (0, 0)),
            pl.BlockSpec((1, C_in), lambda n, r: (0, 0)),
            pl.BlockSpec((C_in, C_mid), lambda n, r: (0, 0)),
            pl.BlockSpec((1, C_mid), lambda n, r: (0, 0)),
            pl.BlockSpec((9 * C_mid, C_out), lambda n, r: (0, 0)),
        ],
        out_specs=pl.BlockSpec((1, TH, W, C_tot), lambda n, r: (n, r, 0, 0)),
        scratch_shapes=[
            pltpu.VMEM((TH + 2, W + 2, C_mid), jnp.float32),   # 1x1 result + halo
        ],
        compiler_params=pltpu.CompilerParams(
            dimension_semantics=("parallel", "parallel"),      # megacore sharding on v7x
        ),
        cost_estimate=pl.CostEstimate(flops=int(flops), transcendentals=0,
                                      bytes_accessed=int(bytes_accessed)),
    )(x_nhwc.astype(jnp.float32), s1, b1, w1_fold, b2, w2_im2col)

    # TODO(synk): QuantAct_Daq re-quantisation is modelled as identity; unit scale returned.
    act_scaling_factor = jnp.float32(1.0)
    return out, act_scaling_factor


# ----------------------------------------------------------------------------
# NCHW drop-in wrapper (layout parity with the PyTorch module).  Prefer the NHWC entry
# point in a channels-last pipeline; the transposes here are a full-tensor relayout.
# ----------------------------------------------------------------------------
def q_dense_unit_forward(x_nchw, params, input_scaling_factor=None, *, tile_h=8):
    x_nhwc = jnp.transpose(x_nchw, (0, 2, 3, 1))
    out_nhwc, sf = q_dense_unit_forward_nhwc(x_nhwc, params, input_scaling_factor,
                                             tile_h=tile_h)
    return jnp.transpose(out_nhwc, (0, 3, 1, 2)), sf


# ----------------------------------------------------------------------------
# Pure-JAX reference (f32) for validation.
# ----------------------------------------------------------------------------
def _reference_forward_nchw(x_nchw, params, eps=1e-5):
    s1 = params["bn1_gamma"] / jnp.sqrt(params["bn1_var"] + eps)
    b1 = params["bn1_beta"] - params["bn1_mean"] * s1
    a = jnp.maximum(x_nchw * s1[None, :, None, None] + b1[None, :, None, None], 0.0)
    y = jax.lax.conv_general_dilated(a, params["conv1_w"], (1, 1), "VALID",
                                     dimension_numbers=("NCHW", "OIHW", "NCHW"))
    s2 = params["bn2_gamma"] / jnp.sqrt(params["bn2_var"] + eps)
    b2 = params["bn2_beta"] - params["bn2_mean"] * s2
    y = jnp.maximum(y * s2[None, :, None, None] + b2[None, :, None, None], 0.0)
    z = jax.lax.conv_general_dilated(y, params["conv2_w"], (1, 1), ((1, 1), (1, 1)),
                                     dimension_numbers=("NCHW", "OIHW", "NCHW"))
    return jnp.concatenate([x_nchw, z], axis=1)


def make_params(key, c_in, c_mid, c_out):
    ks = jax.random.split(key, 10)
    u = lambda k, shape, lo, hi: jax.random.uniform(k, shape, jnp.float32, lo, hi)
    return {
        "bn1_gamma": u(ks[0], (c_in,), 0.8, 1.2),
        "bn1_beta":  u(ks[1], (c_in,), -0.1, 0.1),
        "bn1_mean":  u(ks[2], (c_in,), -0.2, 0.2),
        "bn1_var":   u(ks[3], (c_in,), 0.5, 1.5),
        "conv1_w":   u(ks[4], (c_mid, c_in, 1, 1), -0.3, 0.3),
        "bn2_gamma": u(ks[5], (c_mid,), 0.8, 1.2),
        "bn2_beta":  u(ks[6], (c_mid,), -0.1, 0.1),
        "bn2_mean":  u(ks[7], (c_mid,), -0.2, 0.2),
        "bn2_var":   u(ks[8], (c_mid,), 0.5, 1.5),
        "conv2_w":   u(ks[9], (c_out, c_mid, 3, 3), -0.2, 0.2),
    }


if __name__ == "__main__":
    key = jax.random.PRNGKey(0)
    k_x, k_p = jax.random.split(key)

    N, C_in, H, W = 2, 16, 8, 8     # NCHW input, like PyTorch
    C_mid, C_out = 32, 8            # bottleneck width / growth rate

    x = jax.random.normal(k_x, (N, C_in, H, W), jnp.float32)
    params = make_params(k_p, C_in, C_mid, C_out)

    # tile_h=4 -> grid (N, 2): exercises both row-tile boundary paths (top & bottom halo).
    fwd = jax.jit(lambda xx, pp: q_dense_unit_forward(xx, pp, tile_h=4))
    out, sf = fwd(x, params)
    out = jax.block_until_ready(out)

    assert out.shape == (N, C_in + C_out, H, W), out.shape
    assert jnp.all(jnp.isfinite(out))
    # input channels pass through the concat untouched (exact)
    assert jnp.allclose(out[:, :C_in], x, atol=1e-6)
    # full forward vs. a pure-JAX f32 reference (kernel uses bf16 MXU operands)
    ref = _reference_forward_nchw(x, params)
    assert jnp.allclose(out, ref, atol=1e-1, rtol=1e-1), float(jnp.max(jnp.abs(out - ref)))

    print("KERNEL_OK")
</pallas_src>

<mosaic_0001>
module attributes {stable_mosaic.version = 11 : i64} {
  func.func @_fused_dense_unit_kernel(%arg0: i32, %arg1: i32, %arg2: memref<1x8x8x16xf32, #tpu.memory_space<vmem>>, %arg3: memref<1x16xf32, #tpu.memory_space<vmem>>, %arg4: memref<1x16xf32, #tpu.memory_space<vmem>>, %arg5: memref<16x32xbf16, #tpu.memory_space<vmem>>, %arg6: memref<1x32xf32, #tpu.memory_space<vmem>>, %arg7: memref<288x8xbf16, #tpu.memory_space<vmem>>, %arg8: memref<1x4x8x24xf32, #tpu.memory_space<vmem>>, %arg9: memref<6x10x32xf32, #tpu.memory_space<vmem>>) attributes {dimension_semantics = [#tpu.dimension_semantics<parallel>, #tpu.dimension_semantics<parallel>], iteration_bounds = array<i64: 2, 2>, scalar_prefetch = 0 : i64, scratch_operands = 1 : i64, tpu.core_type = #tpu.core_type<tc>, window_params = [{transform_indices = @transform_0, window_bounds = array<i64: 1, 8, 8, 16>}, {pipeline_mode = #tpu.pipeline_mode<synchronous>, transform_indices = @transform_1, window_bounds = array<i64: 1, 16>}, {pipeline_mode = #tpu.pipeline_mode<synchronous>, transform_indices = @transform_2, window_bounds = array<i64: 1, 16>}, {pipeline_mode = #tpu.pipeline_mode<synchronous>, transform_indices = @transform_3, window_bounds = array<i64: 16, 32>}, {pipeline_mode = #tpu.pipeline_mode<synchronous>, transform_indices = @transform_4, window_bounds = array<i64: 1, 32>}, {pipeline_mode = #tpu.pipeline_mode<synchronous>, transform_indices = @transform_5, window_bounds = array<i64: 288, 8>}, {transform_indices = @transform_6, window_bounds = array<i64: 1, 4, 8, 24>}]} {
    %c4_i32 = arith.constant 4 : i32
    %0 = arith.muli %arg1, %c4_i32 : i32
    %1 = tpu.assume_multiple %0, 4 : i32
    %cst = arith.constant 0.000000e+00 : f32
    %2 = vector.broadcast %cst : f32 to vector<6x1x32xf32>
    %c0 = arith.constant 0 : index
    %c0_0 = arith.constant 0 : index
    %c0_1 = arith.constant 0 : index
    %3 = vector.load %arg9[%c0, %c0_0, %c0_1] : memref<6x10x32xf32, #tpu.memory_space<vmem>>, vector<6x1x32xf32>
    tpu.vector_store %arg9[%c0, %c0_0, %c0_1], %2 {strides = array<i32>} : memref<6x10x32xf32, #tpu.memory_space<vmem>>, vector<6x1x32xf32>,
    %c0_2 = arith.constant 0 : index
    %c9 = arith.constant 9 : index
    %c0_3 = arith.constant 0 : index
    %4 = vector.load %arg9[%c0_2, %c9, %c0_3] : memref<6x10x32xf32, #tpu.memory_space<vmem>>, vector<6x1x32xf32>
    tpu.vector_store %arg9[%c0_2, %c9, %c0_3], %2 {strides = array<i32>} : memref<6x10x32xf32, #tpu.memory_space<vmem>>, vector<6x1x32xf32>,
    %c0_4 = arith.constant 0 : index
    %5 = arith.index_cast %1 : i32 to index
    %c0_5 = arith.constant 0 : index
    %c0_6 = arith.constant 0 : index
    %6 = vector.load %arg2[%c0_4, %5, %c0_5, %c0_6] : memref<1x8x8x16xf32, #tpu.memory_space<vmem>>, vector<1x4x8x16xf32>
    %7 = vector.shape_cast %6 : vector<1x4x8x16xf32> to vector<4x8x16xf32>
    %8 = vector.shape_cast %7 : vector<4x8x16xf32> to vector<32x16xf32>
    %c0_7 = arith.constant 0 : index
    %c0_8 = arith.constant 0 : index
    %9 = vector.load %arg3[%c0_7, %c0_8] : memref<1x16xf32, #tpu.memory_space<vmem>>, vector<1x16xf32>
    %10 = vector.broadcast %9 : vector<1x16xf32> to vector<32x16xf32>
    %11 = arith.mulf %8, %10 : vector<32x16xf32>
    %c0_9 = arith.constant 0 : index
    %c0_10 = arith.constant 0 : index
    %12 = vector.load %arg4[%c0_9, %c0_10] : memref<1x16xf32, #tpu.memory_space<vmem>>, vector<1x16xf32>
    %13 = vector.broadcast %12 : vector<1x16xf32> to vector<32x16xf32>
    %14 = arith.addf %11, %13 : vector<32x16xf32>
    %cst_11 = arith.constant 0.000000e+00 : f32
    %15 = vector.broadcast %cst_11 : f32 to vector<32x16xf32>
    %16 = arith.maximumf %14, %15 : vector<32x16xf32>
    %17 = arith.truncf %16 : vector<32x16xf32> to vector<32x16xbf16>
    %c0_12 = arith.constant 0 : index
    %c0_13 = arith.constant 0 : index
    %18 = vector.load %arg5[%c0_12, %c0_13] : memref<16x32xbf16, #tpu.memory_space<vmem>>, vector<16x32xbf16>
    %cst_14 = arith.constant dense<0.000000e+00> : vector<32x32xf32>
    %19 = tpu.matmul %17, %18, %cst_14 {dimension_numbers = #tpu.dot_dimension_numbers<[1], [0], [0], [1], [0, 0, 1, 1], [], []>} : vector<32x16xbf16>, vector<16x32xbf16>, vector<32x32xf32> -> vector<32x32xf32>
    %c0_15 = arith.constant 0 : index
    %c0_16 = arith.constant 0 : index
    %20 = vector.load %arg6[%c0_15, %c0_16] : memref<1x32xf32, #tpu.memory_space<vmem>>, vector<1x32xf32>
    %21 = vector.broadcast %20 : vector<1x32xf32> to vector<32x32xf32>
    %22 = arith.addf %19, %21 : vector<32x32xf32>
    %cst_17 = arith.constant 0.000000e+00 : f32
    %23 = vector.broadcast %cst_17 : f32 to vector<32x32xf32>
    %24 = arith.maximumf %22, %23 : vector<32x32xf32>
    %25 = vector.shape_cast %24 : vector<32x32xf32> to vector<4x8x32xf32>
    %c1 = arith.constant 1 : index
    %c1_18 = arith.constant 1 : index
    %c0_19 = arith.constant 0 : index
    %26 = vector.load %arg9[%c1, %c1_18, %c0_19] : memref<6x10x32xf32, #tpu.memory_space<vmem>>, vector<4x8x32xf32>
    tpu.vector_store %arg9[%c1, %c1_18, %c0_19], %25 {strides = array<i32>} : memref<6x10x32xf32, #tpu.memory_space<vmem>>, vector<4x8x32xf32>,
    %c1_i32 = arith.constant 1 : i32
    %27 = arith.subi %1, %c1_i32 : i32
    %c0_i32 = arith.constant 0 : i32
    %28 = arith.maxsi %27, %c0_i32 : i32
    %c0_20 = arith.constant 0 : index
    %29 = arith.index_cast %28 : i32 to index
    %c0_21 = arith.constant 0 : index
    %c0_22 = arith.constant 0 : index
    %30 = vector.load %arg2[%c0_20, %29, %c0_21, %c0_22] : memref<1x8x8x16xf32, #tpu.memory_space<vmem>>, vector<1x1x8x16xf32>
    %31 = vector.shape_cast %30 : vector<1x1x8x16xf32> to vector<1x8x16xf32>
    %32 = vector.shape_cast %31 : vector<1x8x16xf32> to vector<8x16xf32>
    %c0_23 = arith.constant 0 : index
    %c0_24 = arith.constant 0 : index
    %33 = vector.load %arg3[%c0_23, %c0_24] : memref<1x16xf32, #tpu.memory_space<vmem>>, vector<1x16xf32>
    %34 = vector.broadcast %33 : vector<1x16xf32> to vector<8x16xf32>
    %35 = arith.mulf %32, %34 : vector<8x16xf32>
    %c0_25 = arith.constant 0 : index
    %c0_26 = arith.constant 0 : index
    %36 = vector.load %arg4[%c0_25, %c0_26] : memref<1x16xf32, #tpu.memory_space<vmem>>, vector<1x16xf32>
    %37 = vector.broadcast %36 : vector<1x16xf32> to vector<8x16xf32>
    %38 = arith.addf %35, %37 : vector<8x16xf32>
    %cst_27 = arith.constant 0.000000e+00 : f32
    %39 = vector.broadcast %cst_27 : f32 to vector<8x16xf32>
    %40 = arith.maximumf %38, %39 : vector<8x16xf32>
    %41 = arith.truncf %40 : vector<8x16xf32> to vector<8x16xbf16>
    %c0_28 = arith.constant 0 : index
    %c0_29 = arith.constant 0 : index
    %42 = vector.load %arg5[%c0_28, %c0_29] : memref<16x32xbf16, #tpu.memory_space<vmem>>, vector<16x32xbf16>
    %cst_30 = arith.constant dense<0.000000e+00> : vector<8x32xf32>
    %43 = tpu.matmul %41, %42, %cst_30 {dimension_numbers = #tpu.dot_dimension_numbers<[1], [0], [0], [1], [0, 0, 1, 1], [], []>} : vector<8x16xbf16>, vector<16x32xbf16>, vector<8x32xf32> -> vector<8x32xf32>
    %c0_31 = arith.constant 0 : index
    %c0_32 = arith.constant 0 : index
    %44 = vector.load %arg6[%c0_31, %c0_32] : memref<1x32xf32, #tpu.memory_space<vmem>>, vector<1x32xf32>
    %45 = vector.broadcast %44 : vector<1x32xf32> to vector<8x32xf32>
    %46 = arith.addf %43, %45 : vector<8x32xf32>
    %cst_33 = arith.constant 0.000000e+00 : f32
    %47 = vector.broadcast %cst_33 : f32 to vector<8x32xf32>
    %48 = arith.maximumf %46, %47 : vector<8x32xf32>
    %c0_i32_34 = arith.constant 0 : i32
    %49 = arith.cmpi sgt, %arg1, %c0_i32_34 : i32
    %50 = arith.extui %49 : i1 to i32
    %51 = arith.sitofp %50 : i32 to f32
    %52 = vector.broadcast %51 : f32 to vector<8x32xf32>
    %53 = arith.mulf %48, %52 : vector<8x32xf32>
    %54 = vector.shape_cast %53 : vector<8x32xf32> to vector<1x8x32xf32>
    %c0_35 = arith.constant 0 : index
    %c1_36 = arith.constant 1 : index
    %c0_37 = arith.constant 0 : index
    %55 = vector.load %arg9[%c0_35, %c1_36, %c0_37] : memref<6x10x32xf32, #tpu.memory_space<vmem>>, vector<1x8x32xf32>
    tpu.vector_store %arg9[%c0_35, %c1_36, %c0_37], %54 {strides = array<i32>} : memref<6x10x32xf32, #tpu.memory_space<vmem>>, vector<1x8x32xf32>,
    %c4_i32_38 = arith.constant 4 : i32
    %56 = arith.addi %1, %c4_i32_38 : i32
    %c7_i32 = arith.constant 7 : i32
    %57 = arith.minsi %56, %c7_i32 : i32
    %c0_39 = arith.constant 0 : index
    %58 = arith.index_cast %57 : i32 to index
    %c0_40 = arith.constant 0 : index
    %c0_41 = arith.constant 0 : index
    %59 = vector.load %arg2[%c0_39, %58, %c0_40, %c0_41] : memref<1x8x8x16xf32, #tpu.memory_space<vmem>>, vector<1x1x8x16xf32>
    %60 = vector.shape_cast %59 : vector<1x1x8x16xf32> to vector<1x8x16xf32>
    %61 = vector.shape_cast %60 : vector<1x8x16xf32> to vector<8x16xf32>
    %c0_42 = arith.constant 0 : index
    %c0_43 = arith.constant 0 : index
    %62 = vector.load %arg3[%c0_42, %c0_43] : memref<1x16xf32, #tpu.memory_space<vmem>>, vector<1x16xf32>
    %63 = vector.broadcast %62 : vector<1x16xf32> to vector<8x16xf32>
    %64 = arith.mulf %61, %63 : vector<8x16xf32>
    %c0_44 = arith.constant 0 : index
    %c0_45 = arith.constant 0 : index
    %65 = vector.load %arg4[%c0_44, %c0_45] : memref<1x16xf32, #tpu.memory_space<vmem>>, vector<1x16xf32>
    %66 = vector.broadcast %65 : vector<1x16xf32> to vector<8x16xf32>
    %67 = arith.addf %64, %66 : vector<8x16xf32>
    %cst_46 = arith.constant 0.000000e+00 : f32
    %68 = vector.broadcast %cst_46 : f32 to vector<8x16xf32>
    %69 = arith.maximumf %67, %68 : vector<8x16xf32>
    %70 = arith.truncf %69 : vector<8x16xf32> to vector<8x16xbf16>
    %c0_47 = arith.constant 0 : index
    %c0_48 = arith.constant 0 : index
    %71 = vector.load %arg5[%c0_47, %c0_48] : memref<16x32xbf16, #tpu.memory_space<vmem>>, vector<16x32xbf16>
    %cst_49 = arith.constant dense<0.000000e+00> : vector<8x32xf32>
    %72 = tpu.matmul %70, %71, %cst_49 {dimension_numbers = #tpu.dot_dimension_numbers<[1], [0], [0], [1], [0, 0, 1, 1], [], []>} : vector<8x16xbf16>, vector<16x32xbf16>, vector<8x32xf32> -> vector<8x32xf32>
    %c0_50 = arith.constant 0 : index
    %c0_51 = arith.constant 0 : index
    %73 = vector.load %arg6[%c0_50, %c0_51] : memref<1x32xf32, #tpu.memory_space<vmem>>, vector<1x32xf32>
    %74 = vector.broadcast %73 : vector<1x32xf32> to vector<8x32xf32>
    %75 = arith.addf %72, %74 : vector<8x32xf32>
    %cst_52 = arith.constant 0.000000e+00 : f32
    %76 = vector.broadcast %cst_52 : f32 to vector<8x32xf32>
    %77 = arith.maximumf %75, %76 : vector<8x32xf32>
    %c1_i32_53 = arith.constant 1 : i32
    %78 = arith.cmpi slt, %arg1, %c1_i32_53 : i32
    %79 = arith.extui %78 : i1 to i32
    %80 = arith.sitofp %79 : i32 to f32
    %81 = vector.broadcast %80 : f32 to vector<8x32xf32>
    %82 = arith.mulf %77, %81 : vector<8x32xf32>
    %83 = vector.shape_cast %82 : vector<8x32xf32> to vector<1x8x32xf32>
    %c5 = arith.constant 5 : index
    %c1_54 = arith.constant 1 : index
    %c0_55 = arith.constant 0 : index
    %84 = vector.load %arg9[%c5, %c1_54, %c0_55] : memref<6x10x32xf32, #tpu.memory_space<vmem>>, vector<1x8x32xf32>
    tpu.vector_store %arg9[%c5, %c1_54, %c0_55], %83 {strides = array<i32>} : memref<6x10x32xf32, #tpu.memory_space<vmem>>, vector<1x8x32xf32>,
    %c0_56 = arith.constant 0 : index
    %c0_57 = arith.constant 0 : index
    %c0_58 = arith.constant 0 : index
    %85 = vector.load %arg9[%c0_56, %c0_57, %c0_58] : memref<6x10x32xf32, #tpu.memory_space<vmem>>, vector<4x8x32xf32>
    %86 = vector.shape_cast %85 : vector<4x8x32xf32> to vector<32x32xf32>
    %c0_59 = arith.constant 0 : index
    %c1_60 = arith.constant 1 : index
    %c0_61 = arith.constant 0 : index
    %87 = vector.load %arg9[%c0_59, %c1_60, %c0_61] : memref<6x10x32xf32, #tpu.memory_space<vmem>>, vector<4x8x32xf32>
    %88 = vector.shape_cast %87 : vector<4x8x32xf32> to vector<32x32xf32>
    %c0_62 = arith.constant 0 : index
    %c2 = arith.constant 2 : index
    %c0_63 = arith.constant 0 : index
    %89 = vector.load %arg9[%c0_62, %c2, %c0_63] : memref<6x10x32xf32, #tpu.memory_space<vmem>>, vector<4x8x32xf32>
    %90 = vector.shape_cast %89 : vector<4x8x32xf32> to vector<32x32xf32>
    %c1_64 = arith.constant 1 : index
    %c0_65 = arith.constant 0 : index
    %c0_66 = arith.constant 0 : index
    %91 = vector.load %arg9[%c1_64, %c0_65, %c0_66] : memref<6x10x32xf32, #tpu.memory_space<vmem>>, vector<4x8x32xf32>
    %92 = vector.shape_cast %91 : vector<4x8x32xf32> to vector<32x32xf32>
    %c1_67 = arith.constant 1 : index
    %c1_68 = arith.constant 1 : index
    %c0_69 = arith.constant 0 : index
    %93 = vector.load %arg9[%c1_67, %c1_68, %c0_69] : memref<6x10x32xf32, #tpu.memory_space<vmem>>, vector<4x8x32xf32>
    %94 = vector.shape_cast %93 : vector<4x8x32xf32> to vector<32x32xf32>
    %c1_70 = arith.constant 1 : index
    %c2_71 = arith.constant 2 : index
    %c0_72 = arith.constant 0 : index
    %95 = vector.load %arg9[%c1_70, %c2_71, %c0_72] : memref<6x10x32xf32, #tpu.memory_space<vmem>>, vector<4x8x32xf32>
    %96 = vector.shape_cast %95 : vector<4x8x32xf32> to vector<32x32xf32>
    %c2_73 = arith.constant 2 : index
    %c0_74 = arith.constant 0 : index
    %c0_75 = arith.constant 0 : index
    %97 = vector.load %arg9[%c2_73, %c0_74, %c0_75] : memref<6x10x32xf32, #tpu.memory_space<vmem>>, vector<4x8x32xf32>
    %98 = vector.shape_cast %97 : vector<4x8x32xf32> to vector<32x32xf32>
    %c2_76 = arith.constant 2 : index
    %c1_77 = arith.constant 1 : index
    %c0_78 = arith.constant 0 : index
    %99 = vector.load %arg9[%c2_76, %c1_77, %c0_78] : memref<6x10x32xf32, #tpu.memory_space<vmem>>, vector<4x8x32xf32>
    %100 = vector.shape_cast %99 : vector<4x8x32xf32> to vector<32x32xf32>
    %c2_79 = arith.constant 2 : index
    %c2_80 = arith.constant 2 : index
    %c0_81 = arith.constant 0 : index
    %101 = vector.load %arg9[%c2_79, %c2_80, %c0_81] : memref<6x10x32xf32, #tpu.memory_space<vmem>>, vector<4x8x32xf32>
    %102 = vector.shape_cast %101 : vector<4x8x32xf32> to vector<32x32xf32>
    %103 = tpu.concatenate %86, %88, %90, %92, %94, %96, %98, %100, %102 in 1 : vector<32x32xf32>, vector<32x32xf32>, vector<32x32xf32>, vector<32x32xf32>, vector<32x32xf32>, vector<32x32xf32>, vector<32x32xf32>, vector<32x32xf32>, vector<32x32xf32> -> vector<32x288xf32>
    %104 = arith.truncf %103 : vector<32x288xf32> to vector<32x288xbf16>
    %c0_82 = arith.constant 0 : index
    %c0_83 = arith.constant 0 : index
    %105 = vector.load %arg7[%c0_82, %c0_83] : memref<288x8xbf16, #tpu.memory_space<vmem>>, vector<288x8xbf16>
    %cst_84 = arith.constant dense<0.000000e+00> : vector<32x8xf32>
    %106 = tpu.matmul %104, %105, %cst_84 {dimension_numbers = #tpu.dot_dimension_numbers<[1], [0], [0], [1], [0, 0, 1, 1], [], []>} : vector<32x288xbf16>, vector<288x8xbf16>, vector<32x8xf32> -> vector<32x8xf32>
    %107 = vector.shape_cast %106 : vector<32x8xf32> to vector<4x8x8xf32>
    %108 = tpu.concatenate %7, %107 in 2 : vector<4x8x16xf32>, vector<4x8x8xf32> -> vector<4x8x24xf32>
    %c0_85 = arith.constant 0 : index
    %c0_86 = arith.constant 0 : index
    %c0_87 = arith.constant 0 : index
    %c0_88 = arith.constant 0 : index
    %109 = vector.load %arg8[%c0_85, %c0_86, %c0_87, %c0_88] : memref<1x4x8x24xf32, #tpu.memory_space<vmem>>, vector<1x4x8x24xf32>
    %110 = vector.shape_cast %109 : vector<1x4x8x24xf32> to vector<4x8x24xf32>
    %111 = vector.shape_cast %108 : vector<4x8x24xf32> to vector<1x4x8x24xf32>
    tpu.vector_store %arg8[%c0_85, %c0_86, %c0_87, %c0_88], %111 {strides = array<i32>} : memref<1x4x8x24xf32, #tpu.memory_space<vmem>>, vector<1x4x8x24xf32>,
    return
  }
  func.func @transform_0(%arg0: i32, %arg1: i32) -> (i32, i32, i32, i32) {
    %c0_i32 = arith.constant 0 : i32
    %c0_i32_0 = arith.constant 0 : i32
    %c0_i32_1 = arith.constant 0 : i32
    %c0_i32_2 = arith.constant 0 : i32
    return %arg0, %c0_i32, %c0_i32_0, %c0_i32_1 : i32, i32, i32, i32
  }
  func.func @transform_1(%arg0: i32, %arg1: i32) -> (i32, i32) {
    %c0_i32 = arith.constant 0 : i32
    %c0_i32_0 = arith.constant 0 : i32
    %c0_i32_1 = arith.constant 0 : i32
    return %c0_i32, %c0_i32_0 : i32, i32
  }
  func.func @transform_2(%arg0: i32, %arg1: i32) -> (i32, i32) {
    %c0_i32 = arith.constant 0 : i32
    %c0_i32_0 = arith.constant 0 : i32
    %c0_i32_1 = arith.constant 0 : i32
    return %c0_i32, %c0_i32_0 : i32, i32
  }
  func.func @transform_3(%arg0: i32, %arg1: i32) -> (i32, i32) {
    %c0_i32 = arith.constant 0 : i32
    %c0_i32_0 = arith.constant 0 : i32
    %c0_i32_1 = arith.constant 0 : i32
    return %c0_i32, %c0_i32_0 : i32, i32
  }
  func.func @transform_4(%arg0: i32, %arg1: i32) -> (i32, i32) {
    %c0_i32 = arith.constant 0 : i32
    %c0_i32_0 = arith.constant 0 : i32
    %c0_i32_1 = arith.constant 0 : i32
    return %c0_i32, %c0_i32_0 : i32, i32
  }
  func.func @transform_5(%arg0: i32, %arg1: i32) -> (i32, i32) {
    %c0_i32 = arith.constant 0 : i32
    %c0_i32_0 = arith.constant 0 : i32
    %c0_i32_1 = arith.constant 0 : i32
    return %c0_i32, %c0_i32_0 : i32, i32
  }
  func.func @transform_6(%arg0: i32, %arg1: i32) -> (i32, i32, i32, i32) {
    %c0_i32 = arith.constant 0 : i32
    %c0_i32_0 = arith.constant 0 : i32
    %c0_i32_1 = arith.constant 0 : i32
    return %arg0, %arg1, %c0_i32, %c0_i32_0 : i32, i32, i32, i32
  }
}

</mosaic_0001>

<bundles_post_ra>
// kernel: _lambda_.1
= control target key start
LH: loop header
LB: loop body
LE: loop exit
PB: predicated region body
PF: predicated region fallthrough
CT: control target
= control target key end

     0   :  { %11 = vsyncpa [#allocation4], 0  ;;  %s1845_s0 = inlined_call_operand.vmem [shape: f32[2,8,8,16], index: 0, kind: input, shape index: {}]   ;;  %s1846_s1 = inlined_call_operand.vmem [shape: f32[1,16], index: 1, kind: input, shape index: {}]   ;;  %s1847_s2 = inlined_call_operand.vmem [shape: f32[1,16], index: 2, kind: input, shape index: {}]   ;;  %s1848_s3 = inlined_call_operand.vmem [shape: bf16[16,32], index: 3, kind: input, shape index: {}]   ;;  %s1849_s4 = inlined_call_operand.vmem [shape: f32[1,32], index: 4, kind: input, shape index: {}]   ;;  %s1850_s5 = inlined_call_operand.vmem [shape: bf16[288,8], index: 5, kind: input, shape index: {}]   ;;  %s1851_s6 = inlined_call_operand.hbm [shape: f32[2,8,8,24], index: 6, kind: output, shape index: {}]  }
   0x1   :  { %13 = vsyncpa [#allocation4 + $0x1], 0  ;;  %s1530_s21 = smov 0   ;;  %s1532_s22 = smov 0  }
   0x2   :  { %s1534_s23 = smov 0   ;;  %s1536_s24 = smov 0  }
   0x3   :  { %s1538_s25 = smov 0   ;;  %s1540_s26 = smov 0  }
   0x4   :  { %s1542_s27 = smov 0   ;;  %s1544_s28 = smov 0  }
   0x5 LB: > { %1855 = sst [smem:[#allocation6_spill]] %s1480_s27  ;;  %s1110_s29 = sadd.s32 4294967295, %s1484_s28   ;;  %s1484_s28 = sphi %s1544_s28, %s19_s28   ;;  %s1480_s27 = sphi %s1542_s27, %s1862_s27   ;;  %s1476_s26 = sphi %s1540_s26, %s1867_s26   ;;  %s1472_s25 = sphi %s1538_s25, %s1860_s25   ;;  %s1468_s24 = sphi %s1536_s24, %s1866_s24   ;;  %s1464_s23 = sphi %s1534_s23, %s1865_s23   ;;  %s1460_s22 = sphi %s1532_s22, %s1864_s22   ;;  %s1456_s21 = sphi %s1530_s21, %s1863_s21  }
   0x6   : > { %s1111_s30 = sadd.s32 4294967294, %s1484_s28   ;;  %s28_s7 = sadd.s32 1, %s1476_s26 }
   0x7   : > { %p29_p0 = scmp.ge.s32.totalorder %s28_s7, 2  ;;  %s31_s8 = sadd.s32 1, %s1480_s27 }
   0x8   : > { %p181_p1 = scmp.ne.s32.totalorder %s1464_s23, %s1460_s22  ;;  %p182_p2 = scmp.eq.s32.totalorder %s1110_s29, 3 }
   0x9   : > { %s1869_s7 = smov (%p29_p0, %s28_s7), 0  ;;  %s1871_s8 = smov (!%p29_p0, %s31_s8), %s1480_s27 }
   0xa   : > { %1856 = sst [smem:[#allocation7_spill]] %s1869_s7  ;;  %s167_s9 = ssub.s32 %s1476_s26, %s1869_s7 }
   0xb   : > { %p1581_p3 = por %p182_p2, %p181_p1  ;;  %p33_p4 = scmp.ge.s32.totalorder %s1871_s8, 2 }
   0xc   : > { %p187_p5 = scmp.ne.s32.totalorder %s1460_s22, %s1456_s21  ;;  %p188_p6 = scmp.eq.s32.totalorder %s1111_s30, 3 }
   0xd   : > { %p1114_p7 = scmp.ge.s32.totalorder %s1484_s28, 1  ;;  %s1873_s8 = smov (%p33_p4, %s1871_s8), 0 }
   0xe   : > { %1858 = sst [smem:[#allocation8_spill]] %s1873_s8  ;;  %p1590_p8 = por %p188_p6, %p187_p5 }
   0xf   : > { %p229_p9 = scmp.lt.s32.totalorder %s1484_s28, 5  ;;  %s166_s12 = ssub.s32 %s1480_s27, %s1873_s8 }
  0x10   : > { %s171_s13 = sadd.s32 1, %s1464_s23  ;;  %s168_s14 = sor.u32 %s167_s9, %s166_s12 }
  0x11   : > { %p230_p10 = pnand %p1114_p7, %p229_p9  ;;  %p169_p11 = scmp.eq.s32.totalorder %s168_s14, 0 }
  0x12   : > { %p259_p12 = scmp.lt.s32.totalorder (!%p230_p10), %s1472_s25, 1  ;;  %s1606_s18 = sshll.u32 (!%p230_p10), %s1468_s24, 2 }
  0x13   : > { %s1599_s15 = scalar_select %p169_p11, %s1464_s23, %s171_s13  }
  0x14   : > { %233 = sbr.rel (%p230_p10) target bundleno = 727 (0x2d7), region = 44  ;;  %s1166_s19 = sshll.u32 (!%p230_p10), %s1468_s24, 5 }
  0x15   : > { %s1126_s9 = sadd.s32 (!%p230_p10), 4294967295, %s1606_s18  ;;  %s484_s12 = sadd.s32 (!%p230_p10), 4, %s1606_s18 }
  0x16   : > { %p396_p13 = scmp.gt.s32.totalorder (!%p230_p10), %s1126_s9, 0  ;;  %p485_p0 = scmp.lt.s32.totalorder (!%p230_p10), %s484_s12, 7 }
  0x17   : > { %p478_p1 = scmp.gt.s32.totalorder (!%p230_p10), %s1468_s24, 0  ;;  %p567_p2 = scmp.lt.s32.totalorder (!%p230_p10), %s1468_s24, 1 }
  0x18   : > { %s1488_s14 = smov (!%p230_p10), 64   ;;  %s1489_s16 = smov (!%p230_p10), 32  }
  0x19   : > { %v1371_v0 = vld [vmem:[%s1848_s3] sm:$0xff]   ;;  %s260_s20 = scalar_select %p259_p12, %s1472_s25, 1  ;;  %v1486_v2 = vmov 0.0   ;;  %vm329_vm0 = vcmask 130048   ;;  %vm1487_vm1 = vmmov 0   ;;  %vm267_vm2 = vcmask 253952  }
  0x1a   : > { %1206 = vmatprep.subr.bf16.mxu0 %v1371_v0  ;;  %v1120_v1 = vld [vmem:[%s1846_s1] ss:$0 sm:$0xff]  ;;  %s1875_s9 = smov (!%p396_p13, %s1126_s9), 0  ;;  %s1877_s12 = smov (!%p485_p0, %s484_s12), 7  ;;  %276 = vst.msk [vmem:[#allocation2 + $0x29] sm:$0x1] %vm267_vm2, %v1486_v2 }
  0x1b   : > { %1207 = vmatpush3.bf16.msra.mxu0 %v1371_v0  ;;  %s1165_s13 = sshll.u32 %s260_s20, 6  ;;  %v1121_v3 = vld [vmem:[%s1847_s2] ss:$0 sm:$0xff]  ;;  %s1127_s7 = sshll.u32 %s1875_s9, 3  ;;  %277 = vst.msk [vmem:[#allocation2 + $0x39] sm:$0x1] %vm267_vm2, %v1486_v2 }
  0x1c   : > { %1212 = vmatprep.subr.bf16.mxu0 %v1486_v2  ;;  %s263_s17 = scalar_lea.vmem %s1845_s0, %s1165_s13  ;;  %v1372_v20 = vld [vmem:[%s1848_s3] sm:$0xff]   ;;  %268 = vst.msk [vmem:[#allocation2] sm:$0x1] %vm267_vm2, %v1486_v2  ;;  %269 = vst.msk [vmem:[#allocation2 + $0x10] sm:$0x1] %vm267_vm2, %v1486_v2  ;;  %v1374_v34 = vld [vmem:[%s1850_s5 + $0x88] sm:$0xff]  }
  0x1d   : > { %s281_s27 = scalar_lea.vmem %s263_s17, %s1166_s19  ;;  %s399_s8 = scalar_lea.vmem %s263_s17, %s1127_s7  ;;  %v1373_v31 = vld [vmem:[%s1848_s3] sm:$0xff]   ;;  %270 = vst.msk [vmem:[#allocation2 + $0x20] sm:$0x1] %vm267_vm2, %v1486_v2  ;;  %271 = vst.msk [vmem:[#allocation2 + $0x30] sm:$0x1] %vm267_vm2, %v1486_v2  ;;  %v1376_v36 = vld [vmem:[%s1850_s5 + $0x78] sm:$0xff]  }
  0x1e   : > { %v1622_v4 = vld [vmem:[%s281_s27] sm:$0xff]  ;;  %v1624_v5 = vld [vmem:[%s281_s27 + $0x8] sm:$0xff]  ;;  %v1626_v6 = vld [vmem:[%s281_s27 + $0x10] sm:$0xff]  ;;  %s1133_s19 = sshll.u32 %s1877_s12, 3  ;;  %272 = vst.msk [vmem:[#allocation2 + $0x40] sm:$0x1] %vm267_vm2, %v1486_v2  ;;  %1174 = vmatprep.subr.bf16.mxu1 %v1376_v36 }
  0x1f   : > { %v293_v7 = vmul.f32 %v1120_v1, %v1622_v4  ;;  %v294_v8 = vmul.f32 %v1120_v1, %v1624_v5  ;;  %v1630_v9 = vld [vmem:[%s281_s27 + $0x18] sm:$0xff]  ;;  %v295_v10 = vmul.f32 %v1120_v1, %v1626_v6  ;;  %v400_v15 = vld [vmem:[%s399_s8] sm:$0xff]  ;;  %s488_s20 = scalar_lea.vmem %s263_s17, %s1133_s19  ;;  %273 = vst.msk [vmem:[#allocation2 + $0x50] sm:$0x1] %vm267_vm2, %v1486_v2  ;;  %274 = vst.msk [vmem:[#allocation2 + $0x9] sm:$0x1] %vm267_vm2, %v1486_v2 }
  0x20   : > { %v296_v11 = vmul.f32 %v1120_v1, %v1630_v9  ;;  %v408_v21 = vmul.f32 %v1120_v1, %v400_v15  ;;  %v489_v22 = vld [vmem:[%s488_s20] sm:$0xff]  ;;  %275 = vst.msk [vmem:[#allocation2 + $0x19] sm:$0x1] %vm267_vm2, %v1486_v2  ;;  %278 = vst.msk [vmem:[#allocation2 + $0x49] sm:$0x1] %vm267_vm2, %v1486_v2  ;;  %v1377_v37 = vld [vmem:[%s1850_s5 + $0x38] sm:$0xff]  }
  0x21   : > { %v304_v12 = vadd.f32 %v1121_v3, %v293_v7  ;;  %v305_v13 = vadd.f32 %v1121_v3, %v294_v8  ;;  %v306_v14 = vadd.f32 %v1121_v3, %v295_v10  ;;  %v497_v28 = vmul.f32 %v1120_v1, %v489_v22  ;;  %279 = vst.msk [vmem:[#allocation2 + $0x59] sm:$0x1] %vm267_vm2, %v1486_v2  ;;  %v1375_v35 = vld [vmem:[%s1850_s5 + $0x80] sm:$0xff]   ;;  %v1378_v38 = vld [vmem:[%s1850_s5 + $0x70] sm:$0xff]   ;;  %v1380_v40 = vld [vmem:[%s1850_s5 + $0x68] sm:$0xff]   ;;  %s1491_s17 = smov 16  }
  0x22   : > { %v307_v16 = vadd.f32 %v1121_v3, %v296_v11  ;;  %v416_v25 = vadd.f32 %v1121_v3, %v408_v21  ;;  %1175 = vmatpush3.bf16.msra.mxu1 %v1377_v37  ;;  %v1379_v39 = vld [vmem:[%s1850_s5 + $0x30] sm:$0xff]   ;;  %v1381_v41 = vld [vmem:[%s1850_s5 + $0x28] sm:$0xff]   ;;  %v1382_v42 = vld [vmem:[%s1850_s5 + $0x60] sm:$0xff]   ;;  %vm390_vm3 = vcmask 261120   ;;  %s479_s30 = scalar_select %p478_p1, 1, 0 }
  0x23   : > { %v308_v17 = vmax.f32 %v304_v12, 0.0  ;;  %v309_v18 = vmax.f32 %v305_v13, 0.0  ;;  %v310_v19 = vmax.f32 %v306_v14, 0.0  ;;  %v505_v30 = vadd.f32 %v1121_v3, %v497_v28  ;;  %1176 = vmatprep.subr.bf16.mxu1 %v1378_v38  ;;  %v1383_v43 = vld [vmem:[%s1850_s5 + $0x20] sm:$0xff]   ;;  %v1384_v44 = vld [vmem:[%s1850_s5 + $0x58] sm:$0xff]   ;;  %v1386_v61 = vld [vmem:[%s1850_s5 + $0x50] sm:$0xff]  }
  0x24   : > { %v311_v23 = vmax.f32 %v307_v16, 0.0  ;;  %v417_v27 = vmax.f32 %v416_v25, 0.0  ;;  %v1122_v45 = vld [vmem:[%s1849_s4] ss:$0 sm:$0xff]  ;;  %s480_s9 = scvt.s32.f32 %s479_s30  ;;  %v1385_v57 = vld [vmem:[%s1850_s5 + $0x18] sm:$0xff]   ;;  %v1387_v1 = vld [vmem:[%s1850_s5 + $0x10] sm:$0xff]  }
  0x25   : > { %v312_v24 = vpack.c.bf16 %v309_v18, %v308_v17  ;;  %v506_v32 = vmax.f32 %v505_v30, 0.0  ;;  %s568_s24 = scalar_select %p567_p2, 1, 0  ;;  %v1388_v7 = vld [vmem:[%s1850_s5 + $0x48] sm:$0xff]   ;;  %v1391_v25 = vld [vmem:[%s1850_s5] sm:$0xff]   ;;  %vm711_vm4 = vcmask 523264  }
  0x26   : > { %v313_v26 = vpack.c.bf16 %v311_v23, %v310_v19  ;;  %v418_v29 = vpack.c.bf16 %v417_v27, %v417_v27  ;;  %1177 = vmatpush3.bf16.msra.mxu1 %v1379_v39  ;;  %v481_v62 = vstv %s480_s9  ;;  %v1389_v10 = vld [vmem:[%s1850_s5 + $0x8] sm:$0xff]   ;;  %vm716_vm5 = vcmask 785408   ;;  %s256_s7 = sand.u32 1, %s1460_s22  }
  0x27   : > { %1208 = vmatprep.mubr.msk.bf16.mxu0 %vm329_vm0, %v312_v24  ;;  %v507_v33 = vpack.c.bf16 %v506_v32, %v506_v32  ;;  %1178 = vmatprep.subr.bf16.mxu1 %v1380_v40  ;;  %s569_s20 = scvt.s32.f32 %s568_s24  ;;  %v1390_v24 = vld [vmem:[%s1850_s5 + $0x40] sm:$0xff]   ;;  %s1490_s24 = smov 96   ;;  %vm1007_vm6 = vcmask 195584  }
  0x28   : > { %1209 = vmatmul.mubr.msk.bf16.vlgmr.msra.gmra.mxu0 %vm329_vm0, %v313_v26  ;;  %s1115_s8 = sshll.u32 %s256_s7, 5 }
  0x29   : > { %1213 = vmatpush3.bf16.msra.mxu0 %v1372_v20  ;;  %1214 = vmatprep.mubr.msk.bf16.mxu0 %vm1487_vm1, %v1486_v2  ;;  %v570_v15 = vstv %s569_s20  ;;  %s258_s19 = scalar_lea.vmem [#allocation3], %s1115_s8  ;;  %s1161_s20 = sshll.u32 %s1472_s25, 3 }
  0x2a   : > { %1218 = vmatprep.subr.bf16.mxu0 %v1486_v2  ;;  %1179 = vmatpush3.bf16.msra.mxu1 %v1381_v41  ;;  %s1025_s29 = sadd.s32 %s1161_s20, %s1606_s18  ;;  %s1028_s27 = sshll.u32 %s258_s19, 4  ;;  %s1784_s27 = int_to_ptr.vmem [resolvable:$true] %s1028_s27 }
  0x2b   : > { %1180 = vmatprep.subr.bf16.mxu1 %v1382_v42  ;;  %s1162_s30 = sshll.u32 %s1025_s29, 7  ;;  %s1794_s18 = scalar_lea.sflag [#allocation4], %s256_s7 }
  0x2c   : > { %s1789_s25 = scalar_lea.hbm %s1851_s6, %s1162_s30  ;;  %s1392_s13 = scalar_lea.vmem %s1784_s27, 512 }
  0x2d   : > { %p1393_p4 = scmp.ne.s32.totalorder %s1784_s27, %s1392_s13 }
  0x2e   : > { %1181 = vmatpush3.bf16.msra.mxu1 %v1383_v43 }
  0x2f   : > { %1182 = vmatprep.subr.bf16.mxu1 %v1384_v44  ;;  %p1394_p5 = pnand %p1393_p4, %p1581_p3 }
  0x30   : > { %1215 = vmatmul.mubr.msk.bf16.vlgmr.msra.gmra.mxu0 %vm329_vm0, %v418_v29 }
  0x31   : > { %1219 = vmatpush3.bf16.msra.mxu0 %v1373_v31  ;;  %1220 = vmatprep.mubr.msk.bf16.mxu0 %vm1487_vm1, %v1486_v2  ;;  %p1395_p6 = pneg %p1394_p5 }
  0x32   : > { %1224 = vmatprep.subr.bf16.mxu0 %v1374_v34  ;;  %1183 = vmatpush3.bf16.msra.mxu1 %v1385_v57 }
  0x33   : > { %1184 = vmatprep.subr.bf16.mxu1 %v1386_v61 }
  0x36   : > { %1185 = vmatpush3.bf16.msra.mxu1 %v1387_v1 }
  0x37   : > { %1186 = vmatprep.subr.bf16.mxu1 %v1388_v7 }
  0x38   : > { %1221 = vmatmul.mubr.msk.bf16.vlgmr.msra.gmra.mxu0 %vm329_vm0, %v507_v33 }
  0x39   : > { %1225 = vmatpush3.bf16.msra.mxu0 %v1374_v34 }
  0x3a   : > { %1226 = vmatprep.subr.bf16.mxu0 %v1375_v35  ;;  %1187 = vmatpush3.bf16.msra.mxu1 %v1389_v10 }
  0x3b   : > { %1188 = vmatprep.subr.bf16.mxu1 %v1390_v24 }
  0x3d   : > { %1227 = vmatpush3.bf16.msra.mxu0 %v1375_v35 }
  0x3e   : > { %1189 = vmatpush3.bf16.msra.mxu1 %v1391_v25 }
  0xe8   : > { %v1210_v46 = vpop.f32.mrf.mxu0 }
  0xe9   : > { %v379_v47 = vadd.f32 %v1210_v46, %v1122_v45 }
  0xea   : > { %v370_v48 = vpop.f32.mrf.mxu0 }
  0xeb   : > { %v387_v49 = vmax.f32 %v379_v47, 0.0  ;;  %v371_v50 = vadd.f32 %v1122_v45, %v370_v48 }
  0xec   : > { %v1211_v51 = vpop.f32.mrf.mxu0 }
  0xed   : > { %393 = vst.msk [vmem:[#allocation2 + $0x31] sm:$0xff] %vm390_vm3, %v387_v49  ;;  %v385_v52 = vmax.f32 %v371_v50, 0.0  ;;  %v382_v53 = vadd.f32 %v1211_v51, %v1122_v45 }
  0xee   : > { %v373_v54 = vpop.f32.mrf.mxu0 }
  0xef   : > { %391 = vst.msk [vmem:[#allocation2 + $0x11] sm:$0xff] %vm390_vm3, %v385_v52  ;;  %v388_v55 = vmax.f32 %v382_v53, 0.0  ;;  %v374_v56 = vadd.f32 %v1122_v45, %v373_v54 }
  0xf0   : > { %v471_v58 = vpop.f32.mrf.mxu0 }
  0xf1   : > { %394 = vst.msk [vmem:[#allocation2 + $0x41] sm:$0xff] %vm390_vm3, %v388_v55  ;;  %v386_v59 = vmax.f32 %v374_v56, 0.0  ;;  %v472_v60 = vadd.f32 %v1122_v45, %v471_v58 }
  0xf2   : > { %v1216_v63 = vpop.f32.mrf.mxu0 }
  0xf3   : > { %392 = vst.msk [vmem:[#allocation2 + $0x21] sm:$0xff] %vm390_vm3, %v386_v59  ;;  %v477_v0 = vmax.f32 %v472_v60, 0.0 }
  0xf4   : > { %v474_v2 = vpop.f32.mrf.mxu0  ;;  %v608_v13 = vld [vmem:[#allocation2 + $0x32] sm:$0xff] }
  0xf5   : > { %v482_v3 = vmul.f32 %v481_v62, %v477_v0  ;;  %v1717_v14 = vld [vmem:[#allocation2 + $0x30] sm:$0xff] }
  0xf6   : > { %v1217_v8 = vpop.f32.mrf.mxu0  ;;  %v594_v19 = vld [vmem:[#allocation2 + $0x12] sm:$0xff] }
  0xf7   : > { %483 = vst.msk [vmem:[#allocation2 + $0x1] sm:$0xff] %vm390_vm3, %v482_v3  ;;  %v1731_v30 = vld [vmem:[#allocation2 + $0x10] sm:$0xff] }
  0xf8   : > { %v560_v11 = vpop.f32.mrf.mxu0  ;;  %v1734_v31 = vld [vmem:[#allocation2 + $0x31] sm:$0xff]  ;;  %v609_v39 = vld [vmem:[#allocation2 + $0x42] sm:$0xff] }
  0xf9   : > { %v561_v12 = vadd.f32 %v1122_v45, %v560_v11  ;;  %v579_v37 = vld [vmem:[#allocation2 + $0x11] sm:$0xff]  ;;  %v1336_v42 = vpack.i.bf16 %v609_v39, %v608_v13  ;;  %v601_v45 = vld [vmem:[#allocation2 + $0x40] sm:$0xff] }
  0xfa   : > { %v1222_v16 = vpop.f32.mrf.mxu0  ;;  %v607_v17 = vld [vmem:[#allocation2 + $0x22] sm:$0xff]  ;;  %v1366_v48 = vpack.i.bf16 %v601_v45, %v1717_v14 }
  0xfb   : > { %v1719_v18 = vld [vmem:[#allocation2 + $0x20] sm:$0xff]  ;;  %v566_v20 = vmax.f32 %v561_v12, 0.0  ;;  %v735_v21 = vpack.c.bf16 %v608_v13, %v607_v17  ;;  %v1311_v23 = vpack.i.bf16 %v607_v17, %v594_v19  ;;  %v1351_v44 = vpack.i.bf16 %v608_v13, %v607_v17 }
  0xfc   : > { %v1316_v22 = vpack.i.bf16 %v1717_v14, %v1719_v18  ;;  %v563_v26 = vpop.f32.mrf.mxu0  ;;  %v603_v28 = vld [vmem:[#allocation2 + $0x21] sm:$0xff]  ;;  %v1326_v32 = vpack.i.bf16 %v1719_v18, %v1731_v30 }
  0xfd   : > { %v571_v27 = vmul.f32 %v570_v15, %v566_v20  ;;  %1228 = vmatprep.mubr.msk.bf16.mxu0 %vm390_vm3, %v735_v21  ;;  %1312 = vrot.lane.b32.xlu0 %v1311_v23, %s1489_s16  ;;  %v1321_v33 = vpack.i.bf16 %v1734_v31, %v603_v28  ;;  %v605_v49 = vld [vmem:[#allocation2 + $0x41] sm:$0xff] }
  0xfe   : > { %1317 = vrot.lane.b32.xlu1 %v1316_v22, %s1488_s14  ;;  %v1223_v29 = vpop.f32.mrf.mxu0  ;;  %v582_v34 = vld [vmem:[#allocation2 + $0x2] sm:$0xff] }
  0xff   : > { %573 = vst.msk [vmem:[#allocation2 + $0x51] sm:$0xff] %vm390_vm3, %v571_v27  ;;  %v578_v35 = vld [vmem:[#allocation2 + $0x1] sm:$0xff]  ;;  %v1341_v36 = vpack.i.bf16 %v594_v19, %v582_v34 }
 0x100   : > { %v1331_v38 = vpack.i.bf16 %v579_v37, %v578_v35  ;;  %v574_v15 = vld [vmem:[#allocation2] sm:$0xff] }
 0x101   : > { %1322 = vrot.lane.b32.xlu0 %v1321_v33, %s1490_s24 }
 0x102   : > { %1327 = vrot.lane.b32.xlu1 %v1326_v32, %s1490_s24 }
 0x105   : > { %1332 = vrot.lane.b32.xlu0 %v1331_v38, %s1489_s16 }
 0x106   : > { %1342 = vrot.lane.b32.xlu1 %v1341_v36, %s1488_s14  ;;  %v610_v40 = vld [vmem:[#allocation2 + $0x52] sm:$0xff] }
 0x107   : > { %v738_v41 = vpack.c.bf16 %v610_v40, %v609_v39  ;;  %v602_v43 = vld [vmem:[#allocation2 + $0x50] sm:$0xff] }
 0x108   : > { %v1356_v46 = vpack.i.bf16 %v602_v43, %v601_v45  ;;  %v606_v47 = vld [vmem:[#allocation2 + $0x51] sm:$0xff] }
 0x109   : > { %1229 = vmatmul.mubr.msk.bf16.vlgmr.msra.gmra.mxu0 %vm390_vm3, %v738_v41  ;;  %1337 = vrot.lane.b32.xlu0 %v1336_v42, %s1489_s16  ;;  %v1361_v50 = vpack.i.bf16 %v606_v47, %v605_v49 }
 0x10a   : > { %1347 = vrot.lane.b32.xlu1 %v1321_v33, %s1489_s16 }
 0x10d   : > { %1357 = vrot.lane.b32.xlu0 %v1356_v46, %s1488_s14 }
 0x10e   : > { %1352 = vrot.lane.b32.xlu1 %v1351_v44, %s1488_s14  ;;  %s1492_s14 = smov [#allocation3]  }
 0x10f   : > { %s1396_s16 = sshll.u32 %s1492_s14, 4  ;;  %s1397_s16 = int_to_ptr.vmem [resolvable:$false] %s1396_s16 }
 0x110   : > { %p1399_p7 = scmp.lt.s32.totalorder %s1784_s27, %s1397_s16 }
 0x111   : > { %1362 = vrot.lane.b32.xlu0 %v1361_v50, %s1490_s24 }
 0x112   : > { %1367 = vrot.lane.b32.xlu1 %v1366_v48, %s1490_s24  ;;  %s1398_s24 = scalar_lea.vmem %s1397_s16, 1024 }
 0x113   : > { %p1400_p9 = scmp.lt.s32.totalorder %s1398_s24, %s1392_s13 }
 0x115   : > { %p1401_p10 = por %p1400_p9, %p1399_p7 }
 0x117   : > { %p1402_p11 = pnand %p1401_p10, %p1395_p6 }
 0x16f   : > { %v1313_v52 = vpop.permute.xlu0 %1312 }
 0x170   : > { %v1318_v51 = vpop.permute.xlu1 %1317  ;;  %v1315_v53 = vunpack.i.h.bf16 %v1313_v52  ;;  %v1314_v54 = vunpack.i.l.bf16 %v1313_v52 }
 0x171   : > { %v1320_v55 = vunpack.i.h.bf16 %v1318_v51  ;;  %v1319_v56 = vunpack.i.l.bf16 %v1318_v51 }
 0x172   : > { %v721_v58 = vsel %vm390_vm3, %v579_v37, %v1314_v54  ;;  %v722_v59 = vsel %vm390_vm3, %v603_v28, %v1315_v53 }
 0x173   : > { %v1323_v60 = vpop.permute.xlu0 %1322  ;;  %v725_v63 = vsel %vm711_vm4, %v721_v58, %v1319_v56  ;;  %v726_v0 = vsel %vm711_vm4, %v722_v59, %v1320_v55 }
 0x174   : > { %v1328_v57 = vpop.permute.xlu1 %1327  ;;  %v1325_v61 = vunpack.i.h.bf16 %v1323_v60  ;;  %v1324_v62 = vunpack.i.l.bf16 %v1323_v60 }
 0x175   : > { %v1330_v16 = vunpack.i.h.bf16 %v1328_v57  ;;  %v1329_v17 = vunpack.i.l.bf16 %v1328_v57 }
 0x176   : > { %v729_v2 = vsel %vm716_vm5, %v725_v63, %v1324_v62  ;;  %v730_v3 = vsel %vm716_vm5, %v726_v0, %v1325_v61 }
 0x177   : > { %v1333_v10 = vpop.permute.xlu0 %1332  ;;  %v734_v11 = vpack.c.bf16 %v730_v3, %v729_v2 }
 0x178   : > { %v1343_v1 = vpop.permute.xlu1 %1342  ;;  %v1335_v12 = vunpack.i.h.bf16 %v1333_v10  ;;  %v1334_v13 = vunpack.i.l.bf16 %v1333_v10 }
 0x179   : > { %v1345_v7 = vunpack.i.h.bf16 %v1343_v1  ;;  %v1344_v8 = vunpack.i.l.bf16 %v1343_v1  ;;  %921 = vmatprep.mubr.bf16.mxu1 %v734_v11 }
 0x17a   : > { %v707_v19 = vsel %vm390_vm3, %v574_v15, %v1334_v13  ;;  %v708_v20 = vsel %vm390_vm3, %v1731_v30, %v1335_v12 }
 0x17b   : > { %v1338_v22 = vpop.permute.xlu0 %1337  ;;  %v712_v23 = vsel %vm711_vm4, %v707_v19, %v1344_v8  ;;  %v713_v24 = vsel %vm711_vm4, %v708_v20, %v1345_v7 }
 0x17c   : > { %v1348_v21 = vpop.permute.xlu1 %1347  ;;  %v717_v25 = vsel %vm716_vm5, %v712_v23, %v1329_v17  ;;  %v718_v26 = vsel %vm716_vm5, %v713_v24, %v1330_v16  ;;  %v1340_v33 = vunpack.i.h.bf16 %v1338_v22  ;;  %v1339_v34 = vunpack.i.l.bf16 %v1338_v22 }
 0x17d   : > { %v733_v27 = vpack.c.bf16 %v718_v26, %v717_v25  ;;  %v1350_v28 = vunpack.i.h.bf16 %v1348_v21  ;;  %v1349_v29 = vunpack.i.l.bf16 %v1348_v21 }
 0x17e   : > { %v724_v42 = vsel %vm390_vm3, %v605_v49, %v1340_v33  ;;  %v723_v43 = vsel %vm390_vm3, %v1734_v31, %v1339_v34 }
 0x17f   : > { %v1358_v35 = vpop.permute.xlu0 %1357  ;;  %922 = vmatmul.mubr.bf16.vlgmr.msra.gmra.mxu1 %v733_v27  ;;  %v710_v39 = vsel %vm390_vm3, %v1717_v14, %v1350_v28  ;;  %v709_v40 = vsel %vm390_vm3, %v1719_v18, %v1349_v29 }
 0x180   : > { %v1353_v32 = vpop.permute.xlu1 %1352  ;;  %v1360_v37 = vunpack.i.h.bf16 %v1358_v35  ;;  %v1359_v38 = vunpack.i.l.bf16 %v1358_v35 }
 0x181   : > { %v1355_v36 = vunpack.i.h.bf16 %v1353_v32  ;;  %v1354_v30 = vunpack.i.l.bf16 %v1353_v32 }
 0x182   : > { %v727_v14 = vsel %vm711_vm4, %v723_v43, %v1359_v38  ;;  %v728_v52 = vsel %vm711_vm4, %v724_v42, %v1360_v37 }
 0x183   : > { %v1363_v46 = vpop.permute.xlu0 %1362  ;;  %v714_v47 = vsel %vm711_vm4, %v709_v40, %v1354_v30  ;;  %v715_v48 = vsel %vm711_vm4, %v710_v39, %v1355_v36 }
 0x184   : > { %v1368_v41 = vpop.permute.xlu1 %1367  ;;  %v1365_v50 = vunpack.i.h.bf16 %v1363_v46  ;;  %v1364_v51 = vunpack.i.l.bf16 %v1363_v46 }
 0x185   : > { %v1370_v44 = vunpack.i.h.bf16 %v1368_v41  ;;  %v1369_v45 = vunpack.i.l.bf16 %v1368_v41 }
 0x186   : > { %v731_v53 = vsel %vm716_vm5, %v727_v14, %v1364_v51  ;;  %v732_v31 = vsel %vm716_vm5, %v728_v52, %v1365_v50 }
 0x187   : > { %v719_v18 = vsel %vm716_vm5, %v714_v47, %v1369_v45  ;;  %v720_v49 = vsel %vm716_vm5, %v715_v48, %v1370_v44  ;;  %v737_v55 = vpack.c.bf16 %v732_v31, %v731_v53 }
 0x188   : > { %v736_v54 = vpack.c.bf16 %v720_v49, %v719_v18 }
 0x189   : > { %929 = vmatprep.mubr.bf16.mxu1 %v737_v55 }
 0x18a   : > { %930 = vmatmul.mubr.bf16.gmra.mxu1 %v736_v54 }
 0x1c9   : > { %v1230_v56 = vpop.f32.mrf.mxu0 }
 0x1cb   : > { %v972_v57 = vpop.f32.mrf.mxu0 }
 0x1cd   : > { %v1231_v61 = vpop.f32.mrf.mxu0 }
 0x1cf   : > { %v975_v2 = vpop.f32.mrf.mxu0 }
 0x23f   : > { %v1190_v58 = vpop.f32.mrf.mxu1 }
 0x241   : > { %v1191_v59 = vpop.f32.mrf.mxu1 }
 0x242   : > { %v1192_v60 = vadd.f32 %v1191_v59, %v1190_v58 }
 0x243   : > { %v1193_v62 = vpop.f32.mrf.mxu1 }
 0x244   : > { %v973_v63 = vadd.f32 %v1192_v60, %v972_v57 }
 0x245   : > { %v1194_v0 = vpop.f32.mrf.mxu1 }
 0x246   : > { %v1195_v1 = vadd.f32 %v1194_v0, %v1193_v62  ;;  %991 = vrot.lane.b32.xlu0 %v973_v63, %s1491_s17 }
 0x248   : > { %v976_v3 = vadd.f32 %v1195_v1, %v975_v2 }
 0x24a   : > { %v1196_v7 = vpop.f32.mrf.mxu1  ;;  %993 = vrot.lane.b32.xlu1 %v976_v3, %s1491_s17 }
 0x24c   : > { %v1197_v8 = vpop.f32.mrf.mxu1 }
 0x24d   : > { %v1198_v10 = vadd.f32 %v1197_v8, %v1196_v7 }
 0x24e   : > { %v1199_v11 = vpop.f32.mrf.mxu1 }
 0x24f   : > { %v981_v12 = vadd.f32 %v1230_v56, %v1198_v10 }
 0x250   : > { %v1200_v13 = vpop.f32.mrf.mxu1 }
 0x251   : > { %v1201_v15 = vadd.f32 %v1200_v13, %v1199_v11  ;;  %995 = vrot.lane.b32.xlu0 %v981_v12, %s1491_s17 }
 0x253   : > { %v984_v16 = vadd.f32 %v1231_v61, %v1201_v15 }
 0x255   : > { %997 = vrot.lane.b32.xlu1 %v984_v16, %s1491_s17 }
 0x2b8   : > { %v992_v17 = vpop.permute.xlu0 %991 }
 0x2b9   : > { %v1003_v19 = vsel %vm329_vm0, %v1622_v4, %v992_v17 }
 0x2ba   : > { %1008 = vst.msk [vmem:[%s258_s19] sm:$0xff] %vm1007_vm6, %v1003_v19 }
 0x2bc   : > { %v994_v20 = vpop.permute.xlu1 %993 }
 0x2bd   : > { %v1004_v21 = vsel %vm329_vm0, %v1624_v5, %v994_v20 }
 0x2be   : > { %1009 = vst.msk [vmem:[%s258_s19 + $0x8] sm:$0xff] %vm1007_vm6, %v1004_v21 }
 0x2c3   : > { %v996_v22 = vpop.permute.xlu0 %995 }
 0x2c4   : > { %v1005_v23 = vsel %vm329_vm0, %v1626_v6, %v996_v22 }
 0x2c5   : > { %1010 = vst.msk [vmem:[%s258_s19 + $0x10] sm:$0xff] %vm1007_vm6, %v1005_v23 }
 0x2c7   : > { %v998_v4 = vpop.permute.xlu1 %997 }
 0x2c8   : > { %v1006_v5 = vsel %vm329_vm0, %v1630_v9, %v998_v4 }
 0x2c9   : > { %1011 = vst.msk [vmem:[%s258_s19 + $0x18] sm:$0xff] %vm1007_vm6, %v1006_v5 }
 0x2ca   : > { %1405 = shalt.err (!%p1402_p11)
}
 0x2cb   : > { %s1406_s17 = scalar_lea.hbm %s1789_s25, 512  ;;  %s1410_s19 = scalar_lea.hbm %s1851_s6, 2048 }
 0x2cc   : > { %p1407_p12 = scmp.ne.s32.totalorder %s1789_s25, %s1406_s17  ;;  %p1411_p1 = scmp.lt.s32.totalorder %s1789_s25, %s1851_s6 }
 0x2cd   : > { %p1412_p2 = scmp.lt.s32.totalorder %s1410_s19, %s1406_s17 }
 0x2ce   : > { %p1408_p13 = pnand %p1407_p12, %p1581_p3 }
 0x2cf   : > { %p1413_p4 = por %p1412_p2, %p1411_p1 }
 0x2d0   : > { %p1409_p0 = pneg %p1408_p13 }
 0x2d2   : > { %p1414_p5 = pnand %p1413_p4, %p1409_p0 }
 0x2d4   : > { %1417 = shalt.err (!%p1414_p5)
}
 0x2d5   : > { %s1493_s30 = smov 128   ;;  %s1494_s9 = smov 8  }
 0x2d6   : > { %1232 = dma.vmem_to_hbm [thread:$0]  (%p1581_p3), %s1784_s27, 512, %s1789_s25, %s1794_s18, %s1493_s30, %s1493_s30, %s1494_s9  }
 0x2d7 PF: > { %p1238_p6 = scmp.ge.s32.totalorder %s1484_s28, 2  ;;  %s1043_s12 = sand.u32 1, %s1456_s21  }
 0x2d8   : > { %s1044_s13 = scalar_lea.sflag [#allocation4], %s1043_s12 }
 0x2d9   : > { %p1235_p7 = pnand %p1238_p6, %p1590_p8 }
 0x2db   : > { %p1236_p9 = pneg %p1235_p7 }
 0x2dd   : > { %1451 = dma.done.wait (%p1236_p9), %s1044_s13, 512  }
 0x2de   : > { %1453 = vsyncadd (%p1236_p9), %s1044_s13, 4294966784  ;;  %s19_s28 = sadd.s32 1, %s1484_s28   ;;  %s1860_s25 = sld [smem:[#allocation6_spill]] }
 0x2df   : > { %p16_p10 = scmp.ge.s32.totalorder %s19_s28, 6   ;;  %s1861_s10 = sld [smem:[#allocation7_spill]] }
 0x2e0   : > { %s1862_s27 = sld [smem:[#allocation8_spill]]  ;;  %s1863_s21 = smov %s1460_s22 }
 0x2e1   : > { %s1864_s22 = smov %s1464_s23  ;;  %s1865_s23 = smov %s1599_s15 }
 0x2e2   : > { %s1866_s24 = smov %s1476_s26  ;;  %18 = sbr.rel (!%p16_p10) target bundleno = 5 (0x5), region = 85 }
 0x2e5   : > { %s1867_s26 = smov %s1861_s10 }
 0x2e7   :  { %1049 = vsyncpa [#allocation4], 1 }
 0x2e8   :  { %1051 = vsyncpa [#allocation4 + $0x1], 1 }

</bundles_post_ra>
